<compile_context>
chip_gen: v5e
topology: v5e:2x2
jax: 0.10.0
libtpu: 0.0.40
codegen_flags: <defaults>
</compile_context>

<pallas_src>
import functools

import jax
import jax.numpy as jnp
from jax.experimental import pallas as pl
from jax.experimental.pallas import tpu as pltpu

_LANES = 128


def _mel_recon_kernel(lengths_ref, tgt_ref, dec_ref, *rest,
                      loss_type, has_post, t_frames, n_channels):
    if has_post:
        post_ref, dec_out_ref, post_out_ref, dec_acc, post_acc = rest
    else:
        dec_out_ref, dec_acc = rest
        post_ref = post_out_ref = post_acc = None

    b = pl.program_id(0)          # batch item ("parallel")
    t = pl.program_id(1)          # tile along the flattened T*C axis ("arbitrary")
    nt = pl.num_programs(1)

    # Zero the per-batch accumulators at the start of each batch item.
    @pl.when(t == 0)
    def _():
        dec_acc[...] = jnp.zeros_like(dec_acc)
        if has_post:
            post_acc[...] = jnp.zeros_like(post_acc)

    # Number of valid flattened elements for this batch item: min(len, T) * C.
    length = lengths_ref[b]
    limit = jnp.minimum(length, t_frames) * n_channels

    _, r_tile, lanes = tgt_ref.shape
    row_ids = jax.lax.broadcasted_iota(jnp.int32, (1, r_tile, lanes), 1)
    lane_ids = jax.lax.broadcasted_iota(jnp.int32, (1, r_tile, lanes), 2)
    flat_idx = (t * r_tile + row_ids) * lanes + lane_ids
    valid = flat_idx < limit      # also masks any tile / lane padding (>= T*C)

    tgt = tgt_ref[...].astype(jnp.float32)
    dec = dec_ref[...].astype(jnp.float32)
    d = tgt - dec
    dec_err = jnp.abs(d) if loss_type == 'mae' else d * d
    # jnp.where (not multiply) so padded garbage (possibly NaN/Inf) never leaks in.
    dec_acc[...] += jnp.where(valid, dec_err, 0.0)

    if has_post:
        post = post_ref[...].astype(jnp.float32)
        p = tgt - post
        post_err = jnp.abs(p) if loss_type == 'mae' else p * p
        post_acc[...] += jnp.where(valid, post_err, 0.0)

    # Single full reduction per batch item, only on the last tile.
    @pl.when(t == nt - 1)
    def _():
        dec_out_ref[...] = jnp.full(dec_out_ref.shape, jnp.sum(dec_acc[...]),
                                    dtype=dec_out_ref.dtype)
        if has_post:
            post_out_ref[...] = jnp.full(post_out_ref.shape, jnp.sum(post_acc[...]),
                                         dtype=post_out_ref.dtype)


def mel_recon_loss(output_lengths, mel_targets, dec_outputs,
                   postnet_outputs=None, loss_type='mae', r_tile_max=2048):
    """Pallas equivalent of MelReconLoss.forward.

    output_lengths: (B,) int
    mel_targets / dec_outputs / postnet_outputs: (B, T, C) float (f32 or bf16)
    Returns (mel_loss_, mel_loss) like the PyTorch module.
    """
    if loss_type not in ('mae', 'mse'):
        raise ValueError('Unknown loss type: {}'.format(loss_type))

    B, T, C = mel_targets.shape
    has_post = postnet_outputs is not None
    n_streams = 3 if has_post else 2
    n_losses = 2 if has_post else 1

    # Lane-dense layout: (B, T, C) -> (B, R, 128).  Free reshape when
    # T*C % 128 == 0 (typical mel shapes); otherwise zero-pad the tail
    # (padding is masked out by flat_idx < min(len,T)*C).
    n = T * C
    r = pl.cdiv(n, _LANES)
    n_pad = r * _LANES

    def to_lane_dense(x):
        flat = x.reshape(B, n)
        if n_pad != n:
            flat = jnp.pad(flat, ((0, 0), (0, n_pad - n)))
        return flat.reshape(B, r, _LANES)

    inputs = [to_lane_dense(mel_targets), to_lane_dense(dec_outputs)]
    if has_post:
        inputs.append(to_lane_dense(postnet_outputs))

    # Tile the flattened axis: r_tile_max (mult. of 8) rows x 128 lanes x 4B
    # = 1 MiB blocks keep 3 double-buffered streams + scratch well inside
    # v7x's scoped VMEM while staying near the HBM roofline.
    r_tile = r if r <= r_tile_max else r_tile_max
    num_r_tiles = pl.cdiv(r, r_tile)

    in_spec = pl.BlockSpec((1, r_tile, _LANES), lambda b, t, lens: (b, t, 0))
    out_spec = pl.BlockSpec((1, 1, _LANES), lambda b, t, lens: (b, 0, 0))
    out_shape = jax.ShapeDtypeStruct((B, 1, _LANES), jnp.float32)
    acc_shape = pltpu.VMEM((1, r_tile, _LANES), jnp.float32)

    itemsize = jnp.dtype(mel_targets.dtype).itemsize
    block_bytes = r_tile * _LANES * itemsize
    acc_bytes = r_tile * _LANES * 4
    vmem_bytes = n_streams * 2 * block_bytes + n_losses * acc_bytes \
        + n_losses * 2 * _LANES * 4
    vmem_limit = int(min(32 * 1024 * 1024, max(16 * 1024 * 1024, 2 * vmem_bytes)))

    kernel = functools.partial(_mel_recon_kernel, loss_type=loss_type,
                               has_post=has_post, t_frames=T, n_channels=C)

    outs = pl.pallas_call(
        kernel,
        out_shape=tuple([out_shape] * n_losses),
        grid_spec=pltpu.PrefetchScalarGridSpec(
            num_scalar_prefetch=1,
            grid=(B, num_r_tiles),
            in_specs=[in_spec] * n_streams,
            out_specs=[out_spec] * n_losses,
            scratch_shapes=[acc_shape] * n_losses,
        ),
        compiler_params=pltpu.CompilerParams(
            dimension_semantics=("parallel", "arbitrary"),
            vmem_limit_bytes=vmem_limit,
        ),
        cost_estimate=pl.CostEstimate(
            flops=6 * n_streams * B * T * C,
            transcendentals=0,
            bytes_accessed=n_streams * B * T * C * itemsize + n_losses * B * _LANES * 4,
        ),
    )(output_lengths.astype(jnp.int32), *inputs)

    if not isinstance(outs, (tuple, list)):
        outs = (outs,)
    if has_post:
        dec_part, post_part = outs
    else:
        (dec_part,) = outs
        post_part = None

    # Valid frame count comes straight from the lengths (no in-kernel reduce).
    valid = jnp.sum(jnp.clip(output_lengths, 0, T).astype(jnp.float32))
    denom = valid * jnp.float32(C)
    mel_loss_ = jnp.sum(dec_part[:, 0, 0]) / denom
    mel_loss = jnp.sum(post_part[:, 0, 0]) / denom if has_post else 0.0
    return mel_loss_, mel_loss


def _reference(output_lengths, mel_targets, dec_outputs, postnet_outputs, loss_type='mae'):
    """Pure-JAX reference mirroring the PyTorch forward."""
    B, T, C = mel_targets.shape
    ids = jnp.arange(T)[None, :]
    mask = (ids < output_lengths[:, None]).astype(jnp.float32)
    valid = jnp.sum(mask)
    if loss_type == 'mae':
        err = lambda a, b: jnp.abs(a - b)
    else:
        err = lambda a, b: (a - b) ** 2
    l_dec = jnp.sum(err(mel_targets, dec_outputs) * mask[:, :, None]) / (valid * C)
    l_post = jnp.sum(err(mel_targets, postnet_outputs) * mask[:, :, None]) / (valid * C)
    return l_dec, l_post


if __name__ == "__main__":
    key = jax.random.PRNGKey(0)
    k1, k2, k3 = jax.random.split(key, 3)

    B, T, C = 2, 16, 32
    mel_targets = jax.random.normal(k1, (B, T, C), dtype=jnp.float32)
    dec_outputs = jax.random.normal(k2, (B, T, C), dtype=jnp.float32)
    postnet_outputs = jax.random.normal(k3, (B, T, C), dtype=jnp.float32)
    output_lengths = jnp.array([12, 7], dtype=jnp.int32)

    # MAE path with postnet.
    mel_loss_, mel_loss = mel_recon_loss(
        output_lengths, mel_targets, dec_outputs, postnet_outputs, loss_type='mae')
    mel_loss_ = jax.block_until_ready(mel_loss_)
    mel_loss = jax.block_until_ready(mel_loss)
    ref_, ref = _reference(output_lengths, mel_targets, dec_outputs,
                           postnet_outputs, loss_type='mae')
    assert jnp.allclose(mel_loss_, ref_, rtol=1e-5, atol=1e-6), (mel_loss_, ref_)
    assert jnp.allclose(mel_loss, ref, rtol=1e-5, atol=1e-6), (mel_loss, ref)

    # MSE path.
    m1, m2 = mel_recon_loss(output_lengths, mel_targets, dec_outputs,
                            postnet_outputs, loss_type='mse')
    r1, r2 = _reference(output_lengths, mel_targets, dec_outputs,
                        postnet_outputs, loss_type='mse')
    m1 = jax.block_until_ready(m1)
    assert jnp.allclose(m1, r1, rtol=1e-5, atol=1e-6), (m1, r1)
    assert jnp.allclose(m2, r2, rtol=1e-5, atol=1e-6), (m2, r2)

    # postnet_outputs=None branch: only 2 streams are DMA'd, second loss is 0.0.
    l1, l2 = mel_recon_loss(output_lengths, mel_targets, dec_outputs, None)
    l1 = jax.block_until_ready(l1)
    assert jnp.allclose(l1, ref_, rtol=1e-5, atol=1e-6), (l1, ref_)
    assert l2 == 0.0

    print("KERNEL_OK")
</pallas_src>

<mosaic_0001>
module attributes {stable_mosaic.version = 11 : i64} {
  func.func @_mel_recon_kernel(%arg0: i32, %arg1: i32, %arg2: memref<2xi32, #tpu.memory_space<smem>>, %arg3: memref<1x4x128xf32, #tpu.memory_space<vmem>>, %arg4: memref<1x4x128xf32, #tpu.memory_space<vmem>>, %arg5: memref<1x4x128xf32, #tpu.memory_space<vmem>>, %arg6: memref<1x1x128xf32, #tpu.memory_space<vmem>>, %arg7: memref<1x1x128xf32, #tpu.memory_space<vmem>>, %arg8: memref<1x4x128xf32, #tpu.memory_space<vmem>>, %arg9: memref<1x4x128xf32, #tpu.memory_space<vmem>>) attributes {dimension_semantics = [#tpu.dimension_semantics<parallel>, #tpu.dimension_semantics<arbitrary>], iteration_bounds = array<i64: 2, 1>, scalar_prefetch = 1 : i64, scratch_operands = 2 : i64, tpu.core_type = #tpu.core_type<tc>, window_params = [{transform_indices = @transform_0, window_bounds = array<i64: 1, 4, 128>}, {transform_indices = @transform_1, window_bounds = array<i64: 1, 4, 128>}, {transform_indices = @transform_2, window_bounds = array<i64: 1, 4, 128>}, {transform_indices = @transform_3, window_bounds = array<i64: 1, 1, 128>}, {transform_indices = @transform_4, window_bounds = array<i64: 1, 1, 128>}]} {
    %c0_i32 = arith.constant 0 : i32
    %0 = arith.cmpi eq, %arg1, %c0_i32 : i32
    %1 = arith.extui %0 : i1 to i32
    %c0_i32_0 = arith.constant 0 : i32
    %2 = arith.cmpi ne, %1, %c0_i32_0 : i32
    scf.if %2 {
      %cst_24 = arith.constant 0.000000e+00 : f32
      %37 = vector.broadcast %cst_24 : f32 to vector<1x4x128xf32>
      %c0_25 = arith.constant 0 : index
      %c0_26 = arith.constant 0 : index
      %c0_27 = arith.constant 0 : index
      %38 = vector.load %arg8[%c0_25, %c0_26, %c0_27] : memref<1x4x128xf32, #tpu.memory_space<vmem>>, vector<1x4x128xf32>
      tpu.vector_store %arg8[%c0_25, %c0_26, %c0_27], %37 {strides = array<i32>} : memref<1x4x128xf32, #tpu.memory_space<vmem>>, vector<1x4x128xf32>,
      %cst_28 = arith.constant 0.000000e+00 : f32
      %39 = vector.broadcast %cst_28 : f32 to vector<1x4x128xf32>
      %c0_29 = arith.constant 0 : index
      %c0_30 = arith.constant 0 : index
      %c0_31 = arith.constant 0 : index
      %40 = vector.load %arg9[%c0_29, %c0_30, %c0_31] : memref<1x4x128xf32, #tpu.memory_space<vmem>>, vector<1x4x128xf32>
      tpu.vector_store %arg9[%c0_29, %c0_30, %c0_31], %39 {strides = array<i32>} : memref<1x4x128xf32, #tpu.memory_space<vmem>>, vector<1x4x128xf32>,
    } else {
    }
    %3 = arith.index_cast %arg0 : i32 to index
    %4 = memref.load %arg2[%3] : memref<2xi32, #tpu.memory_space<smem>>
    %c16_i32 = arith.constant 16 : i32
    %5 = arith.minsi %4, %c16_i32 : i32
    %c32_i32 = arith.constant 32 : i32
    %6 = arith.muli %5, %c32_i32 : i32
    %7 = tpu.iota {dimensions = array<i32: 1>} : vector<1x4x128xi32>
    %8 = tpu.iota {dimensions = array<i32: 2>} : vector<1x4x128xi32>
    %c4_i32 = arith.constant 4 : i32
    %9 = arith.muli %arg1, %c4_i32 : i32
    %10 = vector.broadcast %9 : i32 to vector<1x4x128xi32>
    %11 = arith.addi %10, %7 : vector<1x4x128xi32>
    %c128_i32 = arith.constant 128 : i32
    %12 = vector.broadcast %c128_i32 : i32 to vector<1x4x128xi32>
    %13 = arith.muli %11, %12 : vector<1x4x128xi32>
    %14 = arith.addi %13, %8 : vector<1x4x128xi32>
    %15 = vector.broadcast %6 : i32 to vector<1x4x128xi32>
    %16 = arith.cmpi slt, %14, %15 : vector<1x4x128xi32>
    %c0 = arith.constant 0 : index
    %c0_1 = arith.constant 0 : index
    %c0_2 = arith.constant 0 : index
    %17 = vector.load %arg3[%c0, %c0_1, %c0_2] : memref<1x4x128xf32, #tpu.memory_space<vmem>>, vector<1x4x128xf32>
    %c0_3 = arith.constant 0 : index
    %c0_4 = arith.constant 0 : index
    %c0_5 = arith.constant 0 : index
    %18 = vector.load %arg4[%c0_3, %c0_4, %c0_5] : memref<1x4x128xf32, #tpu.memory_space<vmem>>, vector<1x4x128xf32>
    %19 = arith.subf %17, %18 : vector<1x4x128xf32>
    %20 = math.absf %19 : vector<1x4x128xf32>
    %c0_6 = arith.constant 0 : index
    %c0_7 = arith.constant 0 : index
    %c0_8 = arith.constant 0 : index
    %21 = vector.load %arg8[%c0_6, %c0_7, %c0_8] : memref<1x4x128xf32, #tpu.memory_space<vmem>>, vector<1x4x128xf32>
    %cst = arith.constant 0.000000e+00 : f32
    %22 = vector.broadcast %cst : f32 to vector<1x4x128xf32>
    %23 = arith.select %16, %20, %22 : vector<1x4x128xi1>, vector<1x4x128xf32>
    %24 = arith.addf %21, %23 : vector<1x4x128xf32>
    %c0_9 = arith.constant 0 : index
    %c0_10 = arith.constant 0 : index
    %c0_11 = arith.constant 0 : index
    %25 = vector.load %arg8[%c0_9, %c0_10, %c0_11] : memref<1x4x128xf32, #tpu.memory_space<vmem>>, vector<1x4x128xf32>
    tpu.vector_store %arg8[%c0_9, %c0_10, %c0_11], %24 {strides = array<i32>} : memref<1x4x128xf32, #tpu.memory_space<vmem>>, vector<1x4x128xf32>,
    %c0_12 = arith.constant 0 : index
    %c0_13 = arith.constant 0 : index
    %c0_14 = arith.constant 0 : index
    %26 = vector.load %arg5[%c0_12, %c0_13, %c0_14] : memref<1x4x128xf32, #tpu.memory_space<vmem>>, vector<1x4x128xf32>
    %27 = arith.subf %17, %26 : vector<1x4x128xf32>
    %28 = math.absf %27 : vector<1x4x128xf32>
    %c0_15 = arith.constant 0 : index
    %c0_16 = arith.constant 0 : index
    %c0_17 = arith.constant 0 : index
    %29 = vector.load %arg9[%c0_15, %c0_16, %c0_17] : memref<1x4x128xf32, #tpu.memory_space<vmem>>, vector<1x4x128xf32>
    %cst_18 = arith.constant 0.000000e+00 : f32
    %30 = vector.broadcast %cst_18 : f32 to vector<1x4x128xf32>
    %31 = arith.select %16, %28, %30 : vector<1x4x128xi1>, vector<1x4x128xf32>
    %32 = arith.addf %29, %31 : vector<1x4x128xf32>
    %c0_19 = arith.constant 0 : index
    %c0_20 = arith.constant 0 : index
    %c0_21 = arith.constant 0 : index
    %33 = vector.load %arg9[%c0_19, %c0_20, %c0_21] : memref<1x4x128xf32, #tpu.memory_space<vmem>>, vector<1x4x128xf32>
    tpu.vector_store %arg9[%c0_19, %c0_20, %c0_21], %32 {strides = array<i32>} : memref<1x4x128xf32, #tpu.memory_space<vmem>>, vector<1x4x128xf32>,
    %c0_i32_22 = arith.constant 0 : i32
    %34 = arith.cmpi eq, %arg1, %c0_i32_22 : i32
    %35 = arith.extui %34 : i1 to i32
    %c0_i32_23 = arith.constant 0 : i32
    %36 = arith.cmpi ne, %35, %c0_i32_23 : i32
    scf.if %36 {
      %c0_24 = arith.constant 0 : index
      %c0_25 = arith.constant 0 : index
      %c0_26 = arith.constant 0 : index
      %37 = vector.load %arg8[%c0_24, %c0_25, %c0_26] : memref<1x4x128xf32, #tpu.memory_space<vmem>>, vector<1x4x128xf32>
      %38 = vector.shape_cast %37 : vector<1x4x128xf32> to vector<1x1x4x128xf32>
      %cst_27 = arith.constant dense<0.000000e+00> : vector<1xf32>
      %39 = vector.multi_reduction <add>, %38, %cst_27 [1, 2, 3] : vector<1x1x4x128xf32> to vector<1xf32>
      %40 = vector.shape_cast %39 : vector<1xf32> to vector<1x1x1x1xf32>
      %41 = vector.extract %40[0, 0, 0, 0] : f32 from vector<1x1x1x1xf32>
      %42 = vector.broadcast %41 : f32 to vector<1x1x128xf32>
      %c0_28 = arith.constant 0 : index
      %c0_29 = arith.constant 0 : index
      %c0_30 = arith.constant 0 : index
      %43 = vector.load %arg6[%c0_28, %c0_29, %c0_30] : memref<1x1x128xf32, #tpu.memory_space<vmem>>, vector<1x1x128xf32>
      tpu.vector_store %arg6[%c0_28, %c0_29, %c0_30], %42 {strides = array<i32>} : memref<1x1x128xf32, #tpu.memory_space<vmem>>, vector<1x1x128xf32>,
      %c0_31 = arith.constant 0 : index
      %c0_32 = arith.constant 0 : index
      %c0_33 = arith.constant 0 : index
      %44 = vector.load %arg9[%c0_31, %c0_32, %c0_33] : memref<1x4x128xf32, #tpu.memory_space<vmem>>, vector<1x4x128xf32>
      %45 = vector.shape_cast %44 : vector<1x4x128xf32> to vector<1x1x4x128xf32>
      %cst_34 = arith.constant dense<0.000000e+00> : vector<1xf32>
      %46 = vector.multi_reduction <add>, %45, %cst_34 [1, 2, 3] : vector<1x1x4x128xf32> to vector<1xf32>
      %47 = vector.shape_cast %46 : vector<1xf32> to vector<1x1x1x1xf32>
      %48 = vector.extract %47[0, 0, 0, 0] : f32 from vector<1x1x1x1xf32>
      %49 = vector.broadcast %48 : f32 to vector<1x1x128xf32>
      %c0_35 = arith.constant 0 : index
      %c0_36 = arith.constant 0 : index
      %c0_37 = arith.constant 0 : index
      %50 = vector.load %arg7[%c0_35, %c0_36, %c0_37] : memref<1x1x128xf32, #tpu.memory_space<vmem>>, vector<1x1x128xf32>
      tpu.vector_store %arg7[%c0_35, %c0_36, %c0_37], %49 {strides = array<i32>} : memref<1x1x128xf32, #tpu.memory_space<vmem>>, vector<1x1x128xf32>,
    } else {
    }
    return
  }
  func.func @transform_0(%arg0: i32, %arg1: i32, %arg2: memref<2xi32, #tpu.memory_space<smem>>) -> (i32, i32, i32) {
    %c0_i32 = arith.constant 0 : i32
    %c0_i32_0 = arith.constant 0 : i32
    return %arg0, %arg1, %c0_i32 : i32, i32, i32
  }
  func.func @transform_1(%arg0: i32, %arg1: i32, %arg2: memref<2xi32, #tpu.memory_space<smem>>) -> (i32, i32, i32) {
    %c0_i32 = arith.constant 0 : i32
    %c0_i32_0 = arith.constant 0 : i32
    return %arg0, %arg1, %c0_i32 : i32, i32, i32
  }
  func.func @transform_2(%arg0: i32, %arg1: i32, %arg2: memref<2xi32, #tpu.memory_space<smem>>) -> (i32, i32, i32) {
    %c0_i32 = arith.constant 0 : i32
    %c0_i32_0 = arith.constant 0 : i32
    return %arg0, %arg1, %c0_i32 : i32, i32, i32
  }
  func.func @transform_3(%arg0: i32, %arg1: i32, %arg2: memref<2xi32, #tpu.memory_space<smem>>) -> (i32, i32, i32) {
    %c0_i32 = arith.constant 0 : i32
    %c0_i32_0 = arith.constant 0 : i32
    %c0_i32_1 = arith.constant 0 : i32
    return %arg0, %c0_i32, %c0_i32_0 : i32, i32, i32
  }
  func.func @transform_4(%arg0: i32, %arg1: i32, %arg2: memref<2xi32, #tpu.memory_space<smem>>) -> (i32, i32, i32) {
    %c0_i32 = arith.constant 0 : i32
    %c0_i32_0 = arith.constant 0 : i32
    %c0_i32_1 = arith.constant 0 : i32
    return %arg0, %c0_i32, %c0_i32_0 : i32, i32, i32
  }
}

</mosaic_0001>

<bundles_post_ra>
// kernel: tpu_custom_call.1
= control target key start
LH: loop header
LB: loop body
LE: loop exit
PB: predicated region body
PF: predicated region fallthrough
CT: control target
= control target key end

     0   :  { %s897_s21 = smov [#allocation5]   ;;  %s1102_s0 = inlined_call_operand.hbm [shape: s32[2], index: 0, kind: input, shape index: {}]   ;;  %s1103_s1 = inlined_call_operand.hbm [shape: f32[2,4,128], index: 1, kind: input, shape index: {}]   ;;  %s1104_s2 = inlined_call_operand.hbm [shape: f32[2,4,128], index: 2, kind: input, shape index: {}]   ;;  %s1105_s3 = inlined_call_operand.hbm [shape: f32[2,4,128], index: 3, kind: input, shape index: {}]   ;;  %s1106_s4 = inlined_call_operand.hbm [shape: f32[2,1,128], index: 4, kind: output, shape index: {0}]   ;;  %s1107_s5 = inlined_call_operand.hbm [shape: f32[2,1,128], index: 5, kind: output, shape index: {1}]  }
   0x1   :  { %1111 = sst [smem:[#allocation24_spill]] %s1104_s2  ;;  %s12_s20 = sshll.u32 %s1102_s0, 4  ;;  %s13_s20 = int_to_ptr.hbm [resolvable:$true] %s12_s20 }
   0x2   :  { %15 = dma.hbm_to_smem %s13_s20, 16, %s897_s21, [#allocation4] }
   0x3   :  { %855 = dma.done.wait [#allocation4], 16 }
   0x4   :  { %856 = vsyncadd [#allocation4], 4294967280 }
   0x5   :  { %18 = sfence }
   0x6   :  { %19 = vsyncpa [#allocation7], 0 }
   0x7   :  { %21 = vsyncpa [#allocation7 + $0x1], 0 }
   0x8   :  { %22 = vsyncpa [#allocation10], 0 }
   0x9   :  { %24 = vsyncpa [#allocation10 + $0x1], 0 }
   0xa   :  { %25 = vsyncpa [#allocation8], 0 }
   0xb   :  { %27 = vsyncpa [#allocation8 + $0x1], 0 }
   0xc   :  { %28 = vsyncpa [#allocation14], 0 }
   0xd   :  { %30 = vsyncpa [#allocation14 + $0x1], 0  ;;  %s932_s22 = smov 0   ;;  %s934_s23 = smov 0  }
   0xe   :  { %s936_s24 = smov 0   ;;  %s938_s0 = smov 0  }
   0xf   :  { %s940_s25 = smov 0   ;;  %s942_s26 = smov 0  }
  0x10 LB: > { %1112 = sst [smem:[#allocation20_spill]] %s883_s24  ;;  %s963_s27 = sadd.s32 4294967295, %s895_s26   ;;  %s895_s26 = sphi %s942_s26, %s36_s26   ;;  %s891_s25 = sphi %s940_s25, %s1126_s25   ;;  %s887_s0 = sphi %s938_s0, %s1125_s0   ;;  %s883_s24 = sphi %s936_s24, %s1124_s24   ;;  %s879_s23 = sphi %s934_s23, %s1128_s23   ;;  %s875_s22 = sphi %s932_s22, %s1127_s22  }
  0x11   : > { %1113 = sst [smem:[#allocation21_spill]] %s891_s25  ;;  %s574_s28 = sadd.s32 4294967294, %s895_s26  }
  0x12   : > { %s48_s29 = sadd.s32 1, %s891_s25  ;;  %s57_s30 = sadd.s32 1, %s883_s24 }
  0x13   : > { %p50_p0 = scmp.ge.s32.totalorder %s48_s29, 2  ;;  %p64_p1 = scmp.ne.s32.totalorder %s883_s24, %s879_s23 }
  0x14   : > { %p65_p2 = scmp.eq.s32.totalorder %s895_s26, 0  ;;  %p70_p3 = scmp.ne.s32.totalorder %s879_s23, %s875_s22 }
  0x15   : > { %s1130_s29 = smov (%p50_p0, %s48_s29), 0  ;;  %p71_p5 = scmp.eq.s32.totalorder %s963_s27, 0 }
  0x16   : > { %1114 = sst [smem:[#allocation22_spill]] %s1130_s29  ;;  %p975_p4 = por %p65_p2, %p64_p1 }
  0x17   : > { %s52_s7 = ssub.s32 %s891_s25, %s1130_s29  ;;  %p150_p6 = scmp.eq.s32.totalorder %s963_s27, 1 }
  0x18   : > { %p55_p7 = scmp.eq.s32.totalorder %s52_s7, 0  ;;  %p983_p8 = por %p71_p5, %p70_p3 }
  0x19   : > { %p987_p9 = por %p150_p6, %p64_p1  ;;  %p156_p10 = scmp.eq.s32.totalorder %s574_s28, 1 }
  0x1a   : > { %s992_s10 = scalar_select %p55_p7, %s883_s24, %s57_s30  }
  0x1b   : > { %p994_p11 = por %p156_p10, %p70_p3  ;;  %p576_p12 = scmp.ge.s32.totalorder %s895_s26, 2 }
  0x1c   : > { %1118 = sst [smem:[#allocation23_spill]] %s992_s10  ;;  %p621_p13 = scmp.lt.s32.totalorder %s895_s26, 2 }
  0x1d   : > { %s202_s12 = sand.u32 1, %s883_s24   ;;  %s578_s14 = sshll.u32 %s891_s25, 2 }
  0x1e   : > { %s577_s13 = sshll.u32 %s202_s12, 2  ;;  %p1004_p0 = pnand %p621_p13, %p975_p4 }
  0x1f   : > { %s222_s16 = sand.u32 1, %s895_s26   ;;  %s1121_s2 = sld [smem:[#allocation24_spill]] }
  0x20   : > { %s226_s21 = scalar_lea.vmem [#allocation9], %s577_s13  ;;  %s223_s30 = scalar_lea.sflag [#allocation10], %s222_s16 }
  0x21   : > { %s235_s28 = sshll.u32 %s226_s21, 4  ;;  %p583_p1 = scmp.ge.s32.totalorder %s895_s26, 1  ;;  %s236_s28 = int_to_ptr.vmem [resolvable:$true] %s235_s28 }
  0x22   : > { %p260_p2 = scmp.lt.s32.totalorder %s895_s26, 3  ;;  %s211_s17 = scalar_lea.hbm %s1103_s1, %s578_s14 }
  0x23   : > { %s213_s18 = sshll.u32 %s211_s17, 4  ;;  %s203_s21 = scalar_lea.sflag [#allocation7], %s202_s12  ;;  %s214_s18 = int_to_ptr.hbm [resolvable:$true] %s213_s18 }
  0x24   : > { %p1016_p3 = pnand %p583_p1, %p260_p2  ;;  %s246_s10 = scalar_lea.vmem [#allocation11], %s577_s13 }
  0x25   : > { %s231_s19 = scalar_lea.hbm %s1121_s2, %s578_s14  ;;  %s255_s24 = sshll.u32 %s246_s10, 4  ;;  %s256_s24 = int_to_ptr.vmem [resolvable:$true] %s255_s24 }
  0x26   : > { %s233_s20 = sshll.u32 %s231_s19, 4  ;;  %s206_s19 = scalar_lea.vmem [#allocation6], %s577_s13  ;;  %s234_s20 = int_to_ptr.hbm [resolvable:$true] %s233_s20 }
  0x27   : > { %610 = dma.hbm_to_vmem [thread:$0]  (!%p1004_p0), %s234_s20, 64, %s236_s28, %s223_s30  }
  0x28   : > { %s215_s2 = sshll.u32 %s206_s19, 4  ;;  %s251_s28 = scalar_lea.hbm %s1105_s3, %s578_s14  ;;  %s216_s2 = int_to_ptr.vmem [resolvable:$true] %s215_s2 }
  0x29   : > { %607 = dma.hbm_to_vmem [thread:$0]  (!%p1004_p0), %s214_s18, 64, %s216_s2, %s203_s21  }
  0x2a   : > { %s253_s25 = sshll.u32 %s251_s28, 4  ;;  %264 = sbr.rel (%p1016_p3) target bundleno = 271 (0x10f), region = 32  ;;  %s254_s25 = int_to_ptr.hbm [resolvable:$true] %s253_s25 }
  0x2b   : > { %613 = dma.hbm_to_vmem [thread:$0]  (!%p1004_p0), %s254_s25, 64, %s256_s24, %s223_s30  }
  0x2c   : > { %s1033_s29 = sand.u32 (!%p1016_p3), 1, %s879_s23  }
  0x2d   : > { %s584_s2 = sshll.u32 (!%p1016_p3), %s1033_s29, 2  ;;  %s267_s12 = scalar_lea.sflag (!%p1016_p3), [#allocation7], %s1033_s29 }
  0x2e   : > { %s270_s7 = scalar_lea.vmem (!%p1016_p3), [#allocation6], %s584_s2 }
  0x2f   : > { %858 = dma.done.wait (%p983_p8), %s267_s12, 64  }
  0x30   : > { %860 = vsyncadd (%p983_p8), %s267_s12, 4294967232  ;;  %s276_s24 = sand.u32 1, %s963_s27   ;;  %s280_s10 = scalar_lea.vmem [#allocation9], %s584_s2 }
  0x31   : > { %s277_s25 = scalar_lea.sflag [#allocation10], %s276_s24 }
  0x32   : > { %862 = dma.done.wait (%p983_p8), %s277_s25, 128  }
  0x33   : > { %864 = vsyncadd (%p983_p8), %s277_s25, 4294967168  ;;  %v339_v0 = vlaneseq  ;;  %v898_v1 = vmov 0.0   ;;  %s335_s13 = sld [smem:[#allocation5 + %s887_s0]]  ;;  %v350_v5 = vld [vmem:[%s270_s7] sm:$0xf]  ;;  %s290_s27 = scalar_lea.vmem [#allocation11], %s584_s2 }
  0x34   : > { %333 = vst [vmem:[#allocation2] sm:$0xf] %v898_v1  ;;  %v351_v6 = vld [vmem:[%s280_s10] sm:$0xf]  ;;  %v358_v8 = vld [vmem:[%s290_s27] sm:$0xf]  ;;  %s408_s30 = scalar_lea.hbm %s1106_s4, %s887_s0  ;;  %s421_s20 = scalar_lea.hbm %s1107_s5, %s887_s0 }
  0x35   : > { %v340_v2 = vshrl.u32 %v339_v0, 7  ;;  %334 = vst [vmem:[#allocation3] sm:$0xf] %v898_v1  ;;  %v342_v3 = vand.u32 127, %v339_v0  ;;  %v352_v7 = vsub.f32 %v350_v5, %v351_v6  ;;  %v359_v10 = vsub.f32 %v350_v5, %v358_v8  ;;  %s322_s6 = scalar_lea.vmem [#allocation12], %s1033_s29  ;;  %s412_s18 = sshll.u32 %s408_s30, 4  ;;  %s413_s18 = int_to_ptr.hbm [resolvable:$true] %s412_s18 }
  0x36   : > { %vm369_vm1 = vcmask 1043456   ;;  %s410_s17 = sshll.u32 %s322_s6, 4  ;;  %s396_s28 = scalar_lea.sflag [#allocation8], %s1033_s29  ;;  %s411_s17 = int_to_ptr.vmem [resolvable:$true] %s410_s17 }
  0x37   : > { %v346_v4 = vmul.u32 128, %v340_v2  ;;  %v353_v11 = vand.u32 2147483647, %v352_v7  ;;  %v360_v12 = vand.u32 2147483647, %v359_v10  ;;  %s789_s2 = sshra.s32 %s413_s18, 4  ;;  %s790_s2 = int_to_ptr.hbm [resolvable:$true] %s789_s2 }
  0x38   : > { %s791_s12 = scalar_lea.hbm %s790_s2, 1  ;;  %s795_s25 = scalar_lea.hbm %s1106_s4, 2 }
  0x39   : > { %p336_p4 = scmp.lt.s32.totalorder %s335_s13, 16  ;;  %v347_v9 = vadd.s32 %v346_v4, %v342_v3  ;;  %p792_p5 = scmp.ne.s32.totalorder %s790_s2, %s791_s12 }
  0x3a   : > { %p796_p8 = scmp.lt.s32.totalorder %s790_s2, %s1106_s4  ;;  %p797_p10 = scmp.lt.s32.totalorder %s795_s25, %s791_s12 }
  0x3b   : > { %s1132_s13 = smov (!%p336_p4, %s335_s13), 16  ;;  %v354_v14 = vld [vmem:[#allocation2] sm:$0xf]  ;;  %p793_p6 = pnand %p792_p5, %p987_p9 }
  0x3c   : > { %s587_s8 = sshll.u32 %s1132_s13, 5  ;;  %v361_v15 = vld [vmem:[#allocation3] sm:$0xf]  ;;  %p798_p13 = por %p797_p10, %p796_p8 }
  0x3d   : > { %v348_v13 = vstv %s587_s8  ;;  %p794_p7 = pneg %p793_p6 }
  0x3e   : > { %vm349_vm0 = vcmp.lt.s32.totalorder %v347_v9, %v348_v13 }
  0x3f   : > { %v355_v16 = vsel %vm349_vm0, %v353_v11, 0.0  ;;  %v362_v17 = vsel %vm349_vm0, %v360_v12, 0.0  ;;  %p799_p0 = pnand %p798_p13, %p794_p7 }
  0x40   : > { %v356_v18 = vadd.f32 %v355_v16, %v354_v14  ;;  %v363_v19 = vadd.f32 %v362_v17, %v361_v15 }
  0x42   : > { %357 = vst [vmem:[#allocation2] sm:$0xf] %v356_v18 }
  0x43   : > { %364 = vst [vmem:[#allocation3] sm:$0xf] %v363_v19 }
  0x49   : > { %v368_v20 = vld [vmem:[#allocation2] sm:$0xf] }
  0x4a   : > { %v370_v21 = vsel %vm369_vm1, %v368_v20, 0.0  ;;  %v382_v22 = vld [vmem:[#allocation3] sm:$0xf] }
  0x4b   : > { %371 = vadd.xlane.f32.xlu0 %v370_v21  ;;  %v383_v23 = vsel %vm369_vm1, %v382_v22, 0.0 }
  0x53   : > { %384 = vadd.xlane.f32.xlu0 %v383_v23 }
  0xbe   : > { %v372_v24 = vpop.xlane.xlu0 %371 }
  0xbf   : > { %v373_v25 = vrot.slane %v372_v24, 4 }
  0xc1   : > { %v374_v26 = vadd.f32 %v373_v25, %v372_v24 }
  0xc3   : > { %v375_v27 = vrot.slane %v374_v26, 2 }
  0xc5   : > { %v376_v28 = vadd.f32 %v375_v27, %v374_v26 }
  0xc6   : > { %v385_v29 = vpop.xlane.xlu0 %384 }
  0xc7   : > { %v386_v30 = vrot.slane %v385_v29, 4  ;;  %v377_v31 = vrot.slane %v376_v28, 1 }
  0xc9   : > { %v387_v32 = vadd.f32 %v386_v30, %v385_v29  ;;  %v378_v33 = vadd.f32 %v377_v31, %v376_v28 }
  0xcb   : > { %v388_v34 = vrot.slane %v387_v32, 2  ;;  %590 = vpush %v378_v33 }
  0xcd   : > { %v389_v35 = vadd.f32 %v388_v34, %v387_v32 }
  0xcf   : > { %v390_v36 = vrot.slane %v389_v35, 1 }
  0xd1   : > { %v391_v37 = vadd.f32 %v390_v36, %v389_v35 }
  0xd3   : > { %592 = vpush %v391_v37 }
  0xfc   : > { %s591_s19 = spop %590 }
  0xfd   : > { %v380_v38 = vstv %s591_s19 }
  0xfe   : > { %381 = vst [vmem:[%s322_s6] sm:$0x1] %v380_v38 }
  0xff   : > { %802 = shalt.err (!%p799_p0)
}
 0x100   : > { %600 = dma.vmem_to_hbm [thread:$0]  (%p987_p9), %s411_s17, 16, %s413_s18, %s396_s28  }
 0x101   : > { %s328_s0 = scalar_lea.vmem [#allocation13], %s1033_s29  ;;  %s425_s8 = sshll.u32 %s421_s20, 4  ;;  %s426_s8 = int_to_ptr.hbm [resolvable:$true] %s425_s8 }
 0x102   : > { %s423_s27 = sshll.u32 %s328_s0, 4  ;;  %s400_s15 = scalar_lea.sflag [#allocation14], %s1033_s29  ;;  %s424_s27 = int_to_ptr.vmem [resolvable:$true] %s423_s27 }
 0x103   : > { %s817_s30 = sshra.s32 %s426_s8, 4  ;;  %s823_s17 = scalar_lea.hbm %s1107_s5, 2  ;;  %s818_s30 = int_to_ptr.hbm [resolvable:$true] %s817_s30 }
 0x104   : > { %s593_s14 = spop %592  ;;  %s819_s6 = scalar_lea.hbm %s818_s30, 1 }
 0x105   : > { %v393_v39 = vstv %s593_s14  ;;  %p820_p1 = scmp.ne.s32.totalorder %s818_s30, %s819_s6  ;;  %p824_p4 = scmp.lt.s32.totalorder %s818_s30, %s1107_s5 }
 0x106   : > { %394 = vst [vmem:[%s328_s0] sm:$0x1] %v393_v39  ;;  %p825_p5 = scmp.lt.s32.totalorder %s823_s17, %s819_s6 }
 0x107   : > { %p821_p2 = pnand %p820_p1, %p987_p9 }
 0x108   : > { %p826_p6 = por %p825_p5, %p824_p4 }
 0x109   : > { %p822_p3 = pneg %p821_p2 }
 0x10b   : > { %p827_p7 = pnand %p826_p6, %p822_p3 }
 0x10d   : > { %830 = shalt.err (!%p827_p7)
}
 0x10e   : > { %601 = dma.vmem_to_hbm [thread:$0]  (%p987_p9), %s424_s27, 16, %s426_s8, %s400_s15  }
 0x10f PF: > { %s437_s29 = sand.u32 1, %s875_s22   ;;  %p615_p8 = pnand %p576_p12, %p994_p11 }
 0x110   : > { %s438_s20 = scalar_lea.sflag [#allocation8], %s437_s29 }
 0x111   : > { %p616_p10 = pneg %p615_p8 }
 0x113   : > { %866 = dma.done.wait (%p616_p10), %s438_s20, 16  }
 0x114   : > { %868 = vsyncadd (%p616_p10), %s438_s20, 4294967280  ;;  %s447_s28 = scalar_lea.sflag [#allocation14], %s437_s29 }
 0x115   : > { %870 = dma.done.wait (%p616_p10), %s447_s28, 16  }
 0x116   : > { %872 = vsyncadd (%p616_p10), %s447_s28, 4294967280  ;;  %s36_s26 = sadd.s32 1, %s895_s26   ;;  %s1123_s9 = sld [smem:[#allocation20_spill]] }
 0x117   : > { %p33_p13 = scmp.ge.s32.totalorder %s36_s26, 4   ;;  %s1124_s24 = sld [smem:[#allocation23_spill]] }
 0x118   : > { %s1125_s0 = sld [smem:[#allocation21_spill]]  ;;  %s1127_s22 = smov %s879_s23 }
 0x119   : > { %s1126_s25 = sld [smem:[#allocation22_spill]]  ;;  %35 = sbr.rel (!%p33_p13) target bundleno = 16 (0x10), region = 126 }
 0x11c   : > { %s1128_s23 = smov %s1123_s9 }
 0x11e   :  { %452 = vsyncpa [#allocation7], 1 }
 0x11f   :  { %454 = vsyncpa [#allocation7 + $0x1], 1 }
 0x120   :  { %455 = vsyncpa [#allocation10], 1 }
 0x121   :  { %457 = vsyncpa [#allocation10 + $0x1], 1 }
 0x122   :  { %458 = vsyncpa [#allocation8], 1 }
 0x123   :  { %460 = vsyncpa [#allocation8 + $0x1], 1 }
 0x124   :  { %461 = vsyncpa [#allocation14], 1 }
 0x125   :  { %463 = vsyncpa [#allocation14 + $0x1], 1 }

</bundles_post_ra>
